<compile_context>
chip_gen: v7x
topology: tpu7x:2x2x1
jax: 0.10.0
libtpu: 0.0.40
codegen_flags: <defaults>
</compile_context>

<pallas_src>
import jax
import jax.numpy as jnp
from jax import lax
from jax.experimental import pallas as pl
from jax.experimental.pallas import tpu as pltpu


def _wsum_bias_kernel(w_ref, b_ref, x_ref, o_ref):
    """Weighted channel sum + bias on one batch element, lane-dense tiles.

    w_ref: (C,) f32 SMEM   b_ref: (1,) f32 SMEM
    x_ref: (1, C, R, L) f32 VMEM   o_ref: (1, 1, R, L) f32 VMEM
    """
    C = x_ref.shape[1]
    # Bias folded into the accumulator init (one fewer tile-wide VPU add).
    acc = w_ref[0] * x_ref[:, 0:1, :, :] + b_ref[0]
    # Channel reduction stays on the VPU as unrolled scalar-weight FMAs
    # (C is tiny and static; MXU would be a regression).
    for c in range(1, C):
        acc = acc + w_ref[c] * x_ref[:, c:c + 1, :, :]
    # Single aligned, unmasked, full-block store — interior written exactly once.
    o_ref[...] = acc


def model_forward(x, weight, bias):
    """x: (N, C, H, W) f32, weight: (C,) f32, bias: (1,) f32.
    Returns (N, 1, H+2, W+2) f32 — conv2d(x, 1x1 ones kernel, bias, padding=1)
    followed by the (identity) subtraction."""
    N, C, H, W = x.shape
    HW = H * W
    if HW % 128 == 0:
        R, L = HW // 128, 128          # lane-dense: fully packed 128-lane vregs
    else:
        R, L = H, W                    # fallback for odd spatial sizes
    x2 = x.reshape(N, C, R, L)         # contiguous reshape: layout no-op

    core = pl.pallas_call(
        _wsum_bias_kernel,
        out_shape=jax.ShapeDtypeStruct((N, 1, R, L), jnp.float32),
        grid=(N,),
        in_specs=[
            pl.BlockSpec(memory_space=pltpu.MemorySpace.SMEM),   # weight (C,)
            pl.BlockSpec(memory_space=pltpu.MemorySpace.SMEM),   # bias (1,)
            pl.BlockSpec((1, C, R, L), lambda n: (n, 0, 0, 0)),  # x (lane-dense)
        ],
        out_specs=pl.BlockSpec((1, 1, R, L), lambda n: (n, 0, 0, 0)),
        compiler_params=pltpu.CompilerParams(
            dimension_semantics=("parallel",)),
        cost_estimate=pl.CostEstimate(
            flops=2 * N * C * H * W,
            bytes_accessed=4 * (N * C * H * W + N * H * W),
            transcendentals=0),
    )(weight, bias, x2)

    core = core.reshape(N, 1, H, W)
    # Border of the zero-padded 1x1-conv output equals the bias: tiny trailing pad.
    return lax.pad(core, bias[0],
                   ((0, 0, 0), (0, 0, 0), (1, 1, 0), (1, 1, 0)))


if __name__ == "__main__":
    key = jax.random.PRNGKey(0)
    # Same shape as the reference script's input: (1, 3, 64, 64).
    x = jax.random.normal(key, (1, 3, 64, 64), dtype=jnp.float32)

    # Deterministic "parameters": 1x1 conv kernel of ones, bias = 1.0
    weight = jnp.ones((3,), dtype=jnp.float32)
    bias = jnp.ones((1,), dtype=jnp.float32)

    out = jax.jit(model_forward)(x, weight, bias)
    out = jax.block_until_ready(out)

    # Pure-JAX reference check.
    ref_core = jnp.sum(x * weight[None, :, None, None], axis=1,
                       keepdims=True) + bias[0]
    ref = lax.pad(ref_core, bias[0],
                  ((0, 0, 0), (0, 0, 0), (1, 1, 0), (1, 1, 0)))
    assert out.shape == (1, 1, 66, 66), out.shape
    assert jnp.allclose(out, ref, atol=1e-5, rtol=1e-5), \
        float(jnp.max(jnp.abs(out - ref)))

    print("KERNEL_OK")
</pallas_src>

<mosaic_0001>
module attributes {stable_mosaic.version = 11 : i64} {
  func.func @_wsum_bias_kernel(%arg0: i32, %arg1: memref<3xf32, #tpu.memory_space<smem>>, %arg2: memref<1xf32, #tpu.memory_space<smem>>, %arg3: memref<1x3x32x128xf32, #tpu.memory_space<vmem>>, %arg4: memref<1x1x32x128xf32, #tpu.memory_space<vmem>>) attributes {dimension_semantics = [#tpu.dimension_semantics<parallel>], iteration_bounds = array<i64: 1>, scalar_prefetch = 0 : i64, scratch_operands = 0 : i64, tpu.core_type = #tpu.core_type<tc>, window_params = [{transform_indices = @transform_0, window_bounds = array<i64: 3>}, {transform_indices = @transform_1, window_bounds = array<i64: 1>}, {transform_indices = @transform_2, window_bounds = array<i64: 1, 3, 32, 128>}, {transform_indices = @transform_3, window_bounds = array<i64: 1, 1, 32, 128>}]} {
    %c0 = arith.constant 0 : index
    %0 = memref.load %arg1[%c0] : memref<3xf32, #tpu.memory_space<smem>>
    %c0_0 = arith.constant 0 : index
    %c0_1 = arith.constant 0 : index
    %c0_2 = arith.constant 0 : index
    %c0_3 = arith.constant 0 : index
    %1 = vector.load %arg3[%c0_0, %c0_1, %c0_2, %c0_3] : memref<1x3x32x128xf32, #tpu.memory_space<vmem>>, vector<1x1x32x128xf32>
    %2 = vector.broadcast %0 : f32 to vector<1x1x32x128xf32>
    %3 = arith.mulf %2, %1 : vector<1x1x32x128xf32>
    %c0_4 = arith.constant 0 : index
    %4 = memref.load %arg2[%c0_4] : memref<1xf32, #tpu.memory_space<smem>>
    %5 = vector.broadcast %4 : f32 to vector<1x1x32x128xf32>
    %6 = arith.addf %3, %5 : vector<1x1x32x128xf32>
    %c1 = arith.constant 1 : index
    %7 = memref.load %arg1[%c1] : memref<3xf32, #tpu.memory_space<smem>>
    %c0_5 = arith.constant 0 : index
    %c1_6 = arith.constant 1 : index
    %c0_7 = arith.constant 0 : index
    %c0_8 = arith.constant 0 : index
    %8 = vector.load %arg3[%c0_5, %c1_6, %c0_7, %c0_8] : memref<1x3x32x128xf32, #tpu.memory_space<vmem>>, vector<1x1x32x128xf32>
    %9 = vector.broadcast %7 : f32 to vector<1x1x32x128xf32>
    %10 = arith.mulf %9, %8 : vector<1x1x32x128xf32>
    %11 = arith.addf %6, %10 : vector<1x1x32x128xf32>
    %c2 = arith.constant 2 : index
    %12 = memref.load %arg1[%c2] : memref<3xf32, #tpu.memory_space<smem>>
    %c0_9 = arith.constant 0 : index
    %c2_10 = arith.constant 2 : index
    %c0_11 = arith.constant 0 : index
    %c0_12 = arith.constant 0 : index
    %13 = vector.load %arg3[%c0_9, %c2_10, %c0_11, %c0_12] : memref<1x3x32x128xf32, #tpu.memory_space<vmem>>, vector<1x1x32x128xf32>
    %14 = vector.broadcast %12 : f32 to vector<1x1x32x128xf32>
    %15 = arith.mulf %14, %13 : vector<1x1x32x128xf32>
    %16 = arith.addf %11, %15 : vector<1x1x32x128xf32>
    %c0_13 = arith.constant 0 : index
    %c0_14 = arith.constant 0 : index
    %c0_15 = arith.constant 0 : index
    %c0_16 = arith.constant 0 : index
    %17 = vector.load %arg4[%c0_13, %c0_14, %c0_15, %c0_16] : memref<1x1x32x128xf32, #tpu.memory_space<vmem>>, vector<1x1x32x128xf32>
    tpu.vector_store %arg4[%c0_13, %c0_14, %c0_15, %c0_16], %16 {strides = array<i32>} : memref<1x1x32x128xf32, #tpu.memory_space<vmem>>, vector<1x1x32x128xf32>,
    return
  }
  func.func @transform_0(%arg0: i32) -> i32 {
    %c0_i32 = arith.constant 0 : i32
    %c0_i32_0 = arith.constant 0 : i32
    return %c0_i32 : i32
  }
  func.func @transform_1(%arg0: i32) -> i32 {
    %c0_i32 = arith.constant 0 : i32
    %c0_i32_0 = arith.constant 0 : i32
    return %c0_i32 : i32
  }
  func.func @transform_2(%arg0: i32) -> (i32, i32, i32, i32) {
    %c0_i32 = arith.constant 0 : i32
    %c0_i32_0 = arith.constant 0 : i32
    %c0_i32_1 = arith.constant 0 : i32
    %c0_i32_2 = arith.constant 0 : i32
    return %arg0, %c0_i32, %c0_i32_0, %c0_i32_1 : i32, i32, i32, i32
  }
  func.func @transform_3(%arg0: i32) -> (i32, i32, i32, i32) {
    %c0_i32 = arith.constant 0 : i32
    %c0_i32_0 = arith.constant 0 : i32
    %c0_i32_1 = arith.constant 0 : i32
    %c0_i32_2 = arith.constant 0 : i32
    return %arg0, %c0_i32, %c0_i32_0, %c0_i32_1 : i32, i32, i32, i32
  }
}

</mosaic_0001>

<bundles_post_ra>
// kernel: model_forward.1
= control target key start
LH: loop header
LB: loop body
LE: loop exit
PB: predicated region body
PF: predicated region fallthrough
CT: control target
= control target key end

     0   :  { %9 = vsyncpa [#allocation4], 0  ;;  %s183_s0 = inlined_call_operand.vmem [shape: f32[3], index: 0, kind: input, shape index: {}]   ;;  %s184_s1 = inlined_call_operand.<no memory space> [shape: f32[1], index: 1, kind: input, shape index: {}]   ;;  %s185_s2 = inlined_call_operand.vmem [shape: f32[1,3,32,128], index: 2, kind: input, shape index: {}]   ;;  %s186_s3 = inlined_call_operand.vmem [shape: f32[1,1,32,128], index: 3, kind: output, shape index: {}]  }
   0x1   :  { %s16_s14 = sshll.u32 %s183_s0, 4  ;;  %s17_s14 = int_to_ptr.vmem [resolvable:$true] %s16_s14 }
   0x2   :  { %s94_s15 = scalar_lea.vmem %s17_s14, 16  ;;  %p99_p1 = scmp.lt.s32.totalorder %s17_s14, %s17_s14 }
   0x3   :  { %p95_p0 = scmp.ne.s32.totalorder %s17_s14, %s94_s15  ;;  %p100_p2 = scmp.lt.s32.totalorder %s94_s15, %s94_s15 }
   0x5   :  { %p101_p3 = por %p100_p2, %p99_p1 }
   0x7   :  { %p102_p4 = pnand %p101_p3, %p95_p0 }
   0x9   :  { %105 = shalt.err (!%p102_p4)
}
   0xa   :  { %s108_s16 = smov [#allocation3]  }
   0xb   :  { %19 = dma.vmem_to_smem %s17_s14, 16, %s108_s16, [#allocation4]  }
   0xc   :  { %106 = dma.done.wait [#allocation4], 16  }
   0xd   :  { %107 = vsyncadd [#allocation4], 4294967280 }
   0xe   :  { %27 = sfence }
   0xf   :  { %s28_s17 = sld [smem:[#allocation3]]  ;;  %s83_s18 = sld [smem:[#allocation3 + $0x1]]  ;;  %v29_v0 = vld [vmem:[%s185_s2] sm:$0xff]  ;;  %v30_v2 = vld [vmem:[%s185_s2 + $0x8] sm:$0xff]  ;;  %v39_v3 = vstv %s184_s1  ;;  %v31_v6 = vld [vmem:[%s185_s2 + $0x10] sm:$0xff] }
  0x10   :  { %s88_s19 = sld [smem:[#allocation3 + $0x2]]  ;;  %v84_v1 = vld [vmem:[%s185_s2 + $0x20] sm:$0xff]  ;;  %v85_v5 = vld [vmem:[%s185_s2 + $0x28] sm:$0xff]  ;;  %v86_v10 = vld [vmem:[%s185_s2 + $0x30] sm:$0xff] }
  0x11   :  { %v89_v4 = vld [vmem:[%s185_s2 + $0x40] sm:$0xff]  ;;  %v90_v9 = vld [vmem:[%s185_s2 + $0x48] sm:$0xff]  ;;  %v91_v15 = vld [vmem:[%s185_s2 + $0x50] sm:$0xff] }
  0x12   :  { %v32_v16 = vld [vmem:[%s185_s2 + $0x18] sm:$0xff] }
  0x13   :  { %v87_v17 = vld [vmem:[%s185_s2 + $0x38] sm:$0xff] }
  0x14   :  { %v92_v25 = vld [vmem:[%s185_s2 + $0x58] sm:$0xff] }
  0x15   :  { %v33_v7 = vstv %s28_s17  ;;  %v50_v8 = vstv %s83_s18 }
  0x16   :  { %v34_v11 = vmul.f32 %v33_v7, %v29_v0  ;;  %v51_v12 = vmul.f32 %v84_v1, %v50_v8  ;;  %v65_v13 = vstv %s88_s19  ;;  %v35_v14 = vmul.f32 %v33_v7, %v30_v2 }
  0x17   :  { %v66_v18 = vmul.f32 %v89_v4, %v65_v13  ;;  %v52_v19 = vmul.f32 %v85_v5, %v50_v8  ;;  %v36_v20 = vmul.f32 %v33_v7, %v31_v6  ;;  %v67_v23 = vmul.f32 %v90_v9, %v65_v13 }
  0x18   :  { %v40_v21 = vadd.f32 %v39_v3, %v34_v11  ;;  %v41_v22 = vadd.f32 %v39_v3, %v35_v14  ;;  %v53_v24 = vmul.f32 %v86_v10, %v50_v8  ;;  %v68_v27 = vmul.f32 %v91_v15, %v65_v13 }
  0x19   :  { %v42_v26 = vadd.f32 %v39_v3, %v36_v20  ;;  %v37_v28 = vmul.f32 %v33_v7, %v32_v16  ;;  %v54_v29 = vmul.f32 %v87_v17, %v50_v8  ;;  %v69_v34 = vmul.f32 %v92_v25, %v65_v13 }
  0x1a   :  { %v55_v30 = vadd.f32 %v51_v12, %v40_v21  ;;  %v56_v31 = vadd.f32 %v52_v19, %v41_v22 }
  0x1b   :  { %v57_v32 = vadd.f32 %v53_v24, %v42_v26  ;;  %v43_v33 = vadd.f32 %v39_v3, %v37_v28 }
  0x1c   :  { %v70_v35 = vadd.f32 %v66_v18, %v55_v30  ;;  %v71_v36 = vadd.f32 %v67_v23, %v56_v31 }
  0x1d   :  { %v72_v37 = vadd.f32 %v68_v27, %v57_v32  ;;  %v58_v38 = vadd.f32 %v54_v29, %v43_v33 }
  0x1e   :  { %74 = vst [vmem:[%s186_s3] sm:$0xff] %v70_v35  ;;  %75 = vst [vmem:[%s186_s3 + $0x8] sm:$0xff] %v71_v36 }
  0x1f   :  { %76 = vst [vmem:[%s186_s3 + $0x10] sm:$0xff] %v72_v37  ;;  %v73_v39 = vadd.f32 %v69_v34, %v58_v38 }
  0x21   :  { %77 = vst [vmem:[%s186_s3 + $0x18] sm:$0xff] %v73_v39 }
  0x22   :  { %82 = vsyncpa [#allocation4], 1 }

</bundles_post_ra>
